<compile_context>
chip_gen: v6e
topology: v6e:2x2x1
jax: 0.10.0
libtpu: 0.0.40
codegen_flags: <defaults>
</compile_context>

<pallas_src>
import functools

import jax
import jax.numpy as jnp
from jax.experimental import pallas as pl
from jax.experimental.pallas import tpu as pltpu


# ----------------------------------------------------------------------------- helpers

def _round_up(x, m):
    return ((x + m - 1) // m) * m


def _vmem_budget_bytes():
    """~75% of physical VMEM: ~48 MiB on v7x (64 MiB), ~96 MiB on v5e/v6e (128 MiB)."""
    cap = 64 << 20  # v7x-safe fallback
    try:
        info = pltpu.get_tpu_info()
        cap = getattr(info, "vmem_capacity_bytes", None) or cap
    except Exception:
        pass
    return int(cap) * 3 // 4


def _vmem_estimate(tm, dims):
    """Rough VMEM footprint for one row tile. dims = [feat, hidden, ..., n_pad]."""
    k0, n_out = dims[0], dims[-1]
    max_mid = max(dims[1:])
    w_bytes = sum(dims[i] * dims[i + 1] for i in range(len(dims) - 1)) * 2   # bf16
    b_bytes = sum(dims[1:]) * 4                                              # f32
    return (2 * (tm * k0 * 2)          # x tile (bf16, double-buffered)
            + 2 * (w_bytes + b_bytes)  # resident weights/biases (dbl-buffer alloc)
            + 2 * (tm * n_out * 4)     # output tile (f32, double-buffered)
            + 3 * (tm * max_mid * 4)   # live activation intermediates
            + (2 << 20))               # margin


def _pick_row_tile(m, dims, budget):
    m8 = _round_up(max(m, 1), 8)
    cands = [t for t in (1024, 512, 256, 128, 64, 32, 16, 8)
             if t <= m8 and _vmem_estimate(t, dims) <= budget]
    if not cands:
        raise ValueError("MLP weights too large to hold resident in VMEM "
                         "(K-split fallback not implemented)")
    best = cands[0]
    # Prefer >=2 grid steps (v7x megacore sharding) if tiles stay >=128 rows.
    if pl.cdiv(m8, best) < 2:
        for t in cands:
            if t >= 128 and pl.cdiv(m8, t) >= 2:
                return t
    return best


# ----------------------------------------------------------------------------- kernel

def _mlp_kernel(*refs, num_layers, alpha):
    """Fused MLP over one row tile.

    refs = (x_ref, w0, b0, w1, b1, ..., w_last, b_last, o_ref)
    x / W tiles are bf16; matmul accumulates in f32; bias + PReLU epilogue in f32.
    Hidden layers: PReLU(a @ W + b); final layer: a @ W + b (no activation).
    """
    x_ref = refs[0]
    o_ref = refs[-1]
    wb = refs[1:-1]
    act = x_ref[...]                                     # bf16 (tm, K0)
    for i in range(num_layers):
        w = wb[2 * i][...]                               # bf16 (K_i, N_i), resident
        b = wb[2 * i + 1][...]                           # f32  (1, N_i)
        y = jnp.dot(act, w, preferred_element_type=jnp.float32) + b
        if i < num_layers - 1:
            y = jnp.where(y >= 0.0, y, alpha * y)        # PReLU (f32, alpha immediate)
            act = y.astype(jnp.bfloat16)
        else:
            o_ref[...] = y.astype(o_ref.dtype)


@functools.partial(jax.jit, static_argnames=("alpha", "out_dim"))
def mlp_forward(x, params, *, alpha, out_dim):
    """x: (M, feat_dim). params: ((w,b), ...) with w bf16 (in,out), b f32 (1,out);
    the last layer is already zero-padded to a lane-dense out dim."""
    weights = tuple(w for (w, _) in params)
    biases = tuple(b for (_, b) in params)
    num_layers = len(weights)

    M, K0 = x.shape
    dims = [K0] + [w.shape[1] for w in weights]
    n_pad = dims[-1]

    budget = _vmem_budget_bytes()
    tm = _pick_row_tile(M, dims, budget)
    m_pad = _round_up(M, tm)

    x_bf16 = x.astype(jnp.bfloat16)
    if m_pad != M:
        x_bf16 = jnp.pad(x_bf16, ((0, m_pad - M), (0, 0)))

    in_specs = [pl.BlockSpec((tm, K0), lambda i: (i, 0))]          # x row tile
    operands = [x_bf16]
    for w, b in zip(weights, biases):
        in_specs.append(pl.BlockSpec(w.shape, lambda i: (0, 0)))   # resident weight
        in_specs.append(pl.BlockSpec(b.shape, lambda i: (0, 0)))   # resident bias
        operands.extend((w, b))

    vmem_limit = int(min(max(_vmem_estimate(tm, dims) + (16 << 20), 32 << 20), budget))

    out = pl.pallas_call(
        functools.partial(_mlp_kernel, num_layers=num_layers, alpha=alpha),
        out_shape=jax.ShapeDtypeStruct((m_pad, n_pad), jnp.float32),
        grid=(m_pad // tm,),
        in_specs=in_specs,
        out_specs=pl.BlockSpec((tm, n_pad), lambda i: (i, 0)),
        compiler_params=pltpu.CompilerParams(
            dimension_semantics=("parallel",),
            vmem_limit_bytes=vmem_limit),
    )(*operands)
    return out[:M, :out_dim]


# ----------------------------------------------------------------------------- module

class SimMultiLayerPerceptronPallas:
    """JAX/Pallas port of SimMultiLayerPerceptron (inference forward)."""

    def __init__(self, feat_dim, hidden_dim, num_layers, output_dim, dropout, key,
                 bn=False):
        if num_layers < 2:
            raise ValueError("MLP must have at least two layers!")
        if bn:
            raise NotImplementedError("bn=True path not implemented in Pallas port")
        self.num_layers = num_layers
        self.output_dim = output_dim
        self.dropout_p = dropout                 # eval-mode dropout == identity
        self.prelu_alpha = 0.25                  # nn.PReLU() default (compile-time const)

        dims = [feat_dim] + [hidden_dim] * (num_layers - 1) + [output_dim]
        gain = 2.0 ** 0.5                        # nn.init.calculate_gain('relu')
        keys = jax.random.split(key, num_layers)
        self.weights, self.biases = [], []
        for i in range(num_layers):
            fan_in, fan_out = dims[i], dims[i + 1]
            bound = gain * (6.0 / (fan_in + fan_out)) ** 0.5   # xavier_uniform_
            # Stored as (in, out) so the kernel computes x @ W directly.
            w = jax.random.uniform(keys[i], (fan_in, fan_out),
                                   minval=-bound, maxval=bound, dtype=jnp.float32)
            self.weights.append(w)
            self.biases.append(jnp.zeros((1, fan_out), jnp.float32))

        # Kernel-side parameters: bf16 weights; last layer zero-padded so the output
        # store is lane-dense (multiple of 128 columns).
        n_pad = max(128, _round_up(output_dim, 128))
        kparams = []
        for i in range(num_layers):
            w = self.weights[i].astype(jnp.bfloat16)
            b = self.biases[i]
            if i == num_layers - 1 and n_pad != output_dim:
                w = jnp.pad(w, ((0, 0), (0, n_pad - output_dim)))
                b = jnp.pad(b, ((0, 0), (0, n_pad - output_dim)))
            kparams.append((w, b))
        self._kparams = tuple(kparams)

    def __call__(self, feature):
        return mlp_forward(feature, self._kparams,
                           alpha=self.prelu_alpha, out_dim=self.output_dim)


# ----------------------------------------------------------------------------- test

def _reference(x, weights, biases, alpha):
    """Pure-JAX (f32) mirror of the torch forward (eval mode, query_edges=None)."""
    f = x
    for i in range(len(weights) - 1):
        f = f @ weights[i] + biases[i]
        f = jnp.where(f >= 0.0, f, alpha * f)
    return f @ weights[-1] + biases[-1]


if __name__ == "__main__":
    feat_dim, hidden_dim, output_dim = 64, 128, 32
    num_layers = 3
    batch = 200            # deliberately not a tile multiple: exercises row padding
    dropout = 0.5

    root = jax.random.PRNGKey(0)
    k_model, k_data = jax.random.split(root)

    model = SimMultiLayerPerceptronPallas(
        feat_dim, hidden_dim, num_layers, output_dim, dropout, k_model)

    x = jax.random.normal(k_data, (batch, feat_dim), dtype=jnp.float32)

    out = jax.block_until_ready(model(x))

    ref = _reference(x, model.weights, model.biases, model.prelu_alpha)
    assert out.shape == (batch, output_dim) and out.dtype == jnp.float32
    max_err = float(jnp.max(jnp.abs(out - ref)))
    assert jnp.allclose(out, ref, atol=5e-2, rtol=5e-2), (
        f"mismatch vs reference (max abs err {max_err})")

    print("KERNEL_OK")
</pallas_src>

<mosaic_0001>
module attributes {stable_mosaic.version = 11 : i64} {
  func.func @_mlp_kernel(%arg0: i32, %arg1: memref<128x64xbf16, #tpu.memory_space<vmem>>, %arg2: memref<64x128xbf16, #tpu.memory_space<vmem>>, %arg3: memref<1x128xf32, #tpu.memory_space<vmem>>, %arg4: memref<128x128xbf16, #tpu.memory_space<vmem>>, %arg5: memref<1x128xf32, #tpu.memory_space<vmem>>, %arg6: memref<128x128xbf16, #tpu.memory_space<vmem>>, %arg7: memref<1x128xf32, #tpu.memory_space<vmem>>, %arg8: memref<128x128xf32, #tpu.memory_space<vmem>>) attributes {dimension_semantics = [#tpu.dimension_semantics<parallel>], iteration_bounds = array<i64: 2>, scalar_prefetch = 0 : i64, scratch_operands = 0 : i64, tpu.core_type = #tpu.core_type<tc>, window_params = [{transform_indices = @transform_0, window_bounds = array<i64: 128, 64>}, {pipeline_mode = #tpu.pipeline_mode<synchronous>, transform_indices = @transform_1, window_bounds = array<i64: 64, 128>}, {pipeline_mode = #tpu.pipeline_mode<synchronous>, transform_indices = @transform_2, window_bounds = array<i64: 1, 128>}, {pipeline_mode = #tpu.pipeline_mode<synchronous>, transform_indices = @transform_3, window_bounds = array<i64: 128, 128>}, {pipeline_mode = #tpu.pipeline_mode<synchronous>, transform_indices = @transform_4, window_bounds = array<i64: 1, 128>}, {pipeline_mode = #tpu.pipeline_mode<synchronous>, transform_indices = @transform_5, window_bounds = array<i64: 128, 128>}, {pipeline_mode = #tpu.pipeline_mode<synchronous>, transform_indices = @transform_6, window_bounds = array<i64: 1, 128>}, {transform_indices = @transform_7, window_bounds = array<i64: 128, 128>}]} {
    %c0 = arith.constant 0 : index
    %c0_0 = arith.constant 0 : index
    %0 = vector.load %arg1[%c0, %c0_0] : memref<128x64xbf16, #tpu.memory_space<vmem>>, vector<128x64xbf16>
    %c0_1 = arith.constant 0 : index
    %c0_2 = arith.constant 0 : index
    %1 = vector.load %arg2[%c0_1, %c0_2] : memref<64x128xbf16, #tpu.memory_space<vmem>>, vector<64x128xbf16>
    %c0_3 = arith.constant 0 : index
    %c0_4 = arith.constant 0 : index
    %2 = vector.load %arg3[%c0_3, %c0_4] : memref<1x128xf32, #tpu.memory_space<vmem>>, vector<1x128xf32>
    %cst = arith.constant dense<0.000000e+00> : vector<128x128xf32>
    %3 = tpu.matmul %0, %1, %cst {dimension_numbers = #tpu.dot_dimension_numbers<[1], [0], [0], [1], [0, 0, 1, 1], [], []>} : vector<128x64xbf16>, vector<64x128xbf16>, vector<128x128xf32> -> vector<128x128xf32>
    %4 = vector.broadcast %2 : vector<1x128xf32> to vector<128x128xf32>
    %5 = arith.addf %3, %4 : vector<128x128xf32>
    %cst_5 = arith.constant 0.000000e+00 : f32
    %6 = vector.broadcast %cst_5 : f32 to vector<128x128xf32>
    %7 = arith.cmpf oge, %5, %6 : vector<128x128xf32>
    %cst_6 = arith.constant 2.500000e-01 : f32
    %8 = vector.broadcast %cst_6 : f32 to vector<128x128xf32>
    %9 = arith.mulf %8, %5 : vector<128x128xf32>
    %10 = arith.select %7, %5, %9 : vector<128x128xi1>, vector<128x128xf32>
    %11 = arith.truncf %10 : vector<128x128xf32> to vector<128x128xbf16>
    %c0_7 = arith.constant 0 : index
    %c0_8 = arith.constant 0 : index
    %12 = vector.load %arg4[%c0_7, %c0_8] : memref<128x128xbf16, #tpu.memory_space<vmem>>, vector<128x128xbf16>
    %c0_9 = arith.constant 0 : index
    %c0_10 = arith.constant 0 : index
    %13 = vector.load %arg5[%c0_9, %c0_10] : memref<1x128xf32, #tpu.memory_space<vmem>>, vector<1x128xf32>
    %cst_11 = arith.constant dense<0.000000e+00> : vector<128x128xf32>
    %14 = tpu.matmul %11, %12, %cst_11 {dimension_numbers = #tpu.dot_dimension_numbers<[1], [0], [0], [1], [0, 0, 1, 1], [], []>} : vector<128x128xbf16>, vector<128x128xbf16>, vector<128x128xf32> -> vector<128x128xf32>
    %15 = vector.broadcast %13 : vector<1x128xf32> to vector<128x128xf32>
    %16 = arith.addf %14, %15 : vector<128x128xf32>
    %cst_12 = arith.constant 0.000000e+00 : f32
    %17 = vector.broadcast %cst_12 : f32 to vector<128x128xf32>
    %18 = arith.cmpf oge, %16, %17 : vector<128x128xf32>
    %cst_13 = arith.constant 2.500000e-01 : f32
    %19 = vector.broadcast %cst_13 : f32 to vector<128x128xf32>
    %20 = arith.mulf %19, %16 : vector<128x128xf32>
    %21 = arith.select %18, %16, %20 : vector<128x128xi1>, vector<128x128xf32>
    %22 = arith.truncf %21 : vector<128x128xf32> to vector<128x128xbf16>
    %c0_14 = arith.constant 0 : index
    %c0_15 = arith.constant 0 : index
    %23 = vector.load %arg6[%c0_14, %c0_15] : memref<128x128xbf16, #tpu.memory_space<vmem>>, vector<128x128xbf16>
    %c0_16 = arith.constant 0 : index
    %c0_17 = arith.constant 0 : index
    %24 = vector.load %arg7[%c0_16, %c0_17] : memref<1x128xf32, #tpu.memory_space<vmem>>, vector<1x128xf32>
    %cst_18 = arith.constant dense<0.000000e+00> : vector<128x128xf32>
    %25 = tpu.matmul %22, %23, %cst_18 {dimension_numbers = #tpu.dot_dimension_numbers<[1], [0], [0], [1], [0, 0, 1, 1], [], []>} : vector<128x128xbf16>, vector<128x128xbf16>, vector<128x128xf32> -> vector<128x128xf32>
    %26 = vector.broadcast %24 : vector<1x128xf32> to vector<128x128xf32>
    %27 = arith.addf %25, %26 : vector<128x128xf32>
    %c0_19 = arith.constant 0 : index
    %c0_20 = arith.constant 0 : index
    %28 = vector.load %arg8[%c0_19, %c0_20] : memref<128x128xf32, #tpu.memory_space<vmem>>, vector<128x128xf32>
    tpu.vector_store %arg8[%c0_19, %c0_20], %27 {strides = array<i32>} : memref<128x128xf32, #tpu.memory_space<vmem>>, vector<128x128xf32>,
    return
  }
  func.func @transform_0(%arg0: i32) -> (i32, i32) {
    %c0_i32 = arith.constant 0 : i32
    %c0_i32_0 = arith.constant 0 : i32
    return %arg0, %c0_i32 : i32, i32
  }
  func.func @transform_1(%arg0: i32) -> (i32, i32) {
    %c0_i32 = arith.constant 0 : i32
    %c0_i32_0 = arith.constant 0 : i32
    %c0_i32_1 = arith.constant 0 : i32
    return %c0_i32, %c0_i32_0 : i32, i32
  }
  func.func @transform_2(%arg0: i32) -> (i32, i32) {
    %c0_i32 = arith.constant 0 : i32
    %c0_i32_0 = arith.constant 0 : i32
    %c0_i32_1 = arith.constant 0 : i32
    return %c0_i32, %c0_i32_0 : i32, i32
  }
  func.func @transform_3(%arg0: i32) -> (i32, i32) {
    %c0_i32 = arith.constant 0 : i32
    %c0_i32_0 = arith.constant 0 : i32
    %c0_i32_1 = arith.constant 0 : i32
    return %c0_i32, %c0_i32_0 : i32, i32
  }
  func.func @transform_4(%arg0: i32) -> (i32, i32) {
    %c0_i32 = arith.constant 0 : i32
    %c0_i32_0 = arith.constant 0 : i32
    %c0_i32_1 = arith.constant 0 : i32
    return %c0_i32, %c0_i32_0 : i32, i32
  }
  func.func @transform_5(%arg0: i32) -> (i32, i32) {
    %c0_i32 = arith.constant 0 : i32
    %c0_i32_0 = arith.constant 0 : i32
    %c0_i32_1 = arith.constant 0 : i32
    return %c0_i32, %c0_i32_0 : i32, i32
  }
  func.func @transform_6(%arg0: i32) -> (i32, i32) {
    %c0_i32 = arith.constant 0 : i32
    %c0_i32_0 = arith.constant 0 : i32
    %c0_i32_1 = arith.constant 0 : i32
    return %c0_i32, %c0_i32_0 : i32, i32
  }
  func.func @transform_7(%arg0: i32) -> (i32, i32) {
    %c0_i32 = arith.constant 0 : i32
    %c0_i32_0 = arith.constant 0 : i32
    return %arg0, %c0_i32 : i32, i32
  }
}

</mosaic_0001>

<bundles_post_ra>
// kernel: mlp_forward.1
= control target key start
LH: loop header
LB: loop body
LE: loop exit
PB: predicated region body
PF: predicated region fallthrough
CT: control target
= control target key end

     0   :  { %s1302_s24 = smov 0   ;;  %s1488_s0 = inlined_call_operand.vmem [shape: bf16[256,64], index: 0, kind: input, shape index: {}]   ;;  %s1489_s1 = inlined_call_operand.vmem [shape: bf16[64,128], index: 1, kind: input, shape index: {}]   ;;  %s1490_s2 = inlined_call_operand.vmem [shape: f32[1,128], index: 2, kind: input, shape index: {}]   ;;  %s1491_s3 = inlined_call_operand.vmem [shape: bf16[128,128], index: 3, kind: input, shape index: {}]   ;;  %s1492_s4 = inlined_call_operand.vmem [shape: f32[1,128], index: 4, kind: input, shape index: {}]   ;;  %s1493_s5 = inlined_call_operand.vmem [shape: bf16[128,128], index: 5, kind: input, shape index: {}]   ;;  %s1494_s6 = inlined_call_operand.vmem [shape: f32[1,128], index: 6, kind: input, shape index: {}]   ;;  %s1495_s7 = inlined_call_operand.vmem [shape: f32[256,128], index: 7, kind: output, shape index: {}]  }
   0x1 LB: > { %s1020_s25 = sadd.s32 4294967295, %s1260_s24   ;;  %p1024_p0 = scmp.ge.s32.totalorder %s1260_s24, 1  ;;  %s1260_s24 = sphi %s1302_s24, %s17_s24  }
   0x2   : > { %p238_p1 = scmp.lt.s32.totalorder %s1260_s24, 3 }
   0x4   : > { %p239_p2 = pnand %p1024_p0, %p238_p1 }
   0x5   : > { %s1025_s28 = sshll.u32 (!%p239_p2), %s1020_s25, 4 }
   0x6   : > { %242 = sbr.rel (%p239_p2) target bundleno = 668 (0x29c), region = 48  ;;  %p271_p3 = scmp.lt.s32.totalorder (!%p239_p2), %s1025_s28, 31 }
   0xb   : > { %v1226_v0 = vld [vmem:[%s1489_s1 + $0x18] sm:$0xff]   ;;  %v1227_v1 = vld [vmem:[%s1489_s1 + $0x10] sm:$0xff]   ;;  %v1228_v2 = vld [vmem:[%s1489_s1 + $0x8] sm:$0xff]   ;;  %s1497_s28 = smov (!%p271_p3, %s1025_s28), 31  ;;  %vm378_vm0 = vcmask 523264  }
   0xc   : > { %1114 = vmatprep.subr.bf16.mxu0 %v1226_v0  ;;  %v1238_v3 = vld [vmem:[%s1491_s3 + $0x38] sm:$0xff]   ;;  %s1026_s12 = sshll.u32 %s1497_s28, 2  ;;  %v1239_v4 = vld [vmem:[%s1491_s3 + $0x30] sm:$0xff]   ;;  %v1229_v5 = vld [vmem:[%s1489_s1] sm:$0xff]   ;;  %s1028_s10 = sshll.u32 %s1497_s28, 3 }
   0xd   : > { %1115 = vmatpush3.bf16.msra.mxu0 %v1226_v0  ;;  %s1334_s19 = scalar_lea.vmem %s1488_s0, %s1026_s12  ;;  %1138 = vmatprep.subr.bf16.mxu1 %v1238_v3  ;;  %v1240_v7 = vld [vmem:[%s1491_s3 + $0x28] sm:$0xff]   ;;  %v1241_v10 = vld [vmem:[%s1491_s3 + $0x20] sm:$0xff]   ;;  %v1242_v11 = vld [vmem:[%s1491_s3 + $0x18] sm:$0xff]   ;;  %s1467_s15 = scalar_lea.vmem %s1495_s7, %s1028_s10 }
   0xe   : > { %1116 = vmatprep.subr.bf16.mxu0 %v1227_v1  ;;  %v1230_v6 = vld [vmem:[%s1334_s19] sm:$0xff]   ;;  %1139 = vmatpush3.bf16.msra.mxu1 %v1238_v3  ;;  %v1231_v8 = vld [vmem:[%s1334_s19 + $0x8] sm:$0xff]   ;;  %v1232_v9 = vld [vmem:[%s1334_s19 + $0x10] sm:$0xff]  }
   0xf   : > { %1140 = vmatprep.subr.bf16.mxu1 %v1239_v4  ;;  %1122 = vmatprep.mubr.msk.bf16.mxu0 %vm378_vm0, %v1230_v6  ;;  %v1233_v12 = vld [vmem:[%s1334_s19 + $0x18] sm:$0xff]   ;;  %v1234_v13 = vld [vmem:[%s1334_s19 + $0x20] sm:$0xff]   ;;  %v1235_v14 = vld [vmem:[%s1334_s19 + $0x28] sm:$0xff]  }
  0x10   : > { %v1236_v15 = vld [vmem:[%s1334_s19 + $0x30] sm:$0xff]   ;;  %v1237_v16 = vld [vmem:[%s1334_s19 + $0x38] sm:$0xff]   ;;  %v1244_v18 = vld [vmem:[%s1491_s3 + $0x8] sm:$0xff]  }
  0x11   : > { %1117 = vmatpush3.bf16.msra.mxu0 %v1227_v1  ;;  %v1243_v17 = vld [vmem:[%s1491_s3 + $0x10] sm:$0xff]   ;;  %v1245_v19 = vld [vmem:[%s1491_s3] sm:$0xff]   ;;  %v1246_v20 = vld [vmem:[%s1493_s5 + $0x38] sm:$0xff]  }
  0x12   : > { %1118 = vmatprep.subr.bf16.mxu0 %v1228_v2  ;;  %1141 = vmatpush3.bf16.msra.mxu1 %v1239_v4  ;;  %v1376_v21 = vld [vmem:[%s1493_s5 + $0x30] sm:$0xff]   ;;  %v1382_v22 = vld [vmem:[%s1493_s5 + $0x28] sm:$0xff]   ;;  %v1389_v23 = vld [vmem:[%s1493_s5 + $0x20] sm:$0xff]  }
  0x13   : > { %1142 = vmatprep.subr.bf16.mxu1 %v1240_v7  ;;  %v1396_v24 = vld [vmem:[%s1493_s5 + $0x18] sm:$0xff]   ;;  %v1404_v26 = vld [vmem:[%s1490_s2] ss:$0 sm:$0xff] }
  0x15   : > { %1119 = vmatpush3.bf16.msra.mxu0 %v1228_v2 }
  0x16   : > { %1120 = vmatprep.subr.bf16.mxu0 %v1229_v5  ;;  %1143 = vmatpush3.bf16.msra.mxu1 %v1240_v7 }
  0x17   : > { %1144 = vmatprep.subr.bf16.mxu1 %v1241_v10 }
  0x19   : > { %1121 = vmatpush3.bf16.msra.mxu0 %v1229_v5 }
  0x1a   : > { %1145 = vmatpush3.bf16.msra.mxu1 %v1241_v10  ;;  %1170 = vmatprep.subr.bf16.mxu0 %v1246_v20 }
  0x1b   : > { %1146 = vmatprep.subr.bf16.mxu1 %v1242_v11 }
  0x1c   : > { %1123 = vmatmul.mubr.msk.bf16.vlgmr.msra.gmra.mxu0 %vm378_vm0, %v1231_v8 }
  0x1d   : > { %1126 = vmatprep.mubr.msk.bf16.mxu0 %vm378_vm0, %v1232_v9  ;;  %1171 = vmatpush3.bf16.msra.mxu0 %v1246_v20 }
  0x1e   : > { %1147 = vmatpush3.bf16.msra.mxu1 %v1242_v11  ;;  %1172 = vmatprep.subr.bf16.mxu0 %v1376_v21 }
  0x1f   : > { %1148 = vmatprep.subr.bf16.mxu1 %v1243_v17 }
  0x21   : > { %1173 = vmatpush3.bf16.msra.mxu0 %v1376_v21 }
  0x22   : > { %1149 = vmatpush3.bf16.msra.mxu1 %v1243_v17  ;;  %1174 = vmatprep.subr.bf16.mxu0 %v1382_v22 }
  0x23   : > { %1150 = vmatprep.subr.bf16.mxu1 %v1244_v18 }
  0x24   : > { %1127 = vmatmul.mubr.msk.bf16.gmra.mxu0 %vm378_vm0, %v1233_v12 }
  0x25   : > { %1130 = vmatprep.mubr.msk.bf16.mxu0 %vm378_vm0, %v1234_v13  ;;  %1175 = vmatpush3.bf16.msra.mxu0 %v1382_v22 }
  0x26   : > { %1151 = vmatpush3.bf16.msra.mxu1 %v1244_v18  ;;  %1176 = vmatprep.subr.bf16.mxu0 %v1389_v23 }
  0x27   : > { %1152 = vmatprep.subr.bf16.mxu1 %v1245_v19 }
  0x29   : > { %1177 = vmatpush3.bf16.msra.mxu0 %v1389_v23 }
  0x2a   : > { %1153 = vmatpush3.bf16.msra.mxu1 %v1245_v19  ;;  %1178 = vmatprep.subr.bf16.mxu0 %v1396_v24 }
  0x2b   : > { %1202 = vmatprep.subr.bf16.mxu1 %v1246_v20 }
  0x2c   : > { %1131 = vmatmul.mubr.msk.bf16.gmra.mxu0 %vm378_vm0, %v1235_v14 }
  0x2d   : > { %1134 = vmatprep.mubr.msk.bf16.mxu0 %vm378_vm0, %v1236_v15  ;;  %1179 = vmatpush3.bf16.msra.mxu0 %v1396_v24 }
  0x34   : > { %1135 = vmatmul.mubr.msk.bf16.gmra.mxu0 %vm378_vm0, %v1237_v16 }
  0xdc   : > { %v1124_v25 = vpop.f32.mrf.mxu0 }
  0xdd   : > { %v446_v29 = vadd.f32 %v1124_v25, %v1404_v26 }
  0xde   : > { %v437_v27 = vpop.f32.mrf.mxu0 }
  0xdf   : > { %v438_v28 = vadd.f32 %v1404_v26, %v437_v27  ;;  %v518_v36 = vmul.f32 0.25, %v446_v29  ;;  %vm502_vm3 = vcmp.ge.f32.partialorder %v446_v29, 0.0 }
  0xe0   : > { %v1125_v30 = vpop.f32.mrf.mxu0 }
  0xe1   : > { %v449_v31 = vadd.f32 %v1125_v30, %v1404_v26  ;;  %v516_v33 = vmul.f32 0.25, %v438_v28  ;;  %vm500_vm2 = vcmp.ge.f32.partialorder %v438_v28, 0.0  ;;  %v534_v47 = vsel %vm502_vm3, %v446_v29, %v518_v36  ;;  %v1253_v36 = vld [vmem:[%s1493_s5] sm:$0xff]  }
  0xe2   : > { %v440_v32 = vpop.f32.mrf.mxu0 }
  0xe3   : > { %vm503_vm1 = vcmp.ge.f32.partialorder %v449_v31, 0.0  ;;  %v519_v34 = vmul.f32 0.25, %v449_v31  ;;  %v441_v35 = vadd.f32 %v1404_v26, %v440_v32  ;;  %v532_v42 = vsel %vm500_vm2, %v438_v28, %v516_v33 }
  0xe4   : > { %v1128_v37 = vpop.f32.mrf.mxu0 }
  0xe5   : > { %v517_v38 = vmul.f32 0.25, %v441_v35  ;;  %vm501_vm4 = vcmp.ge.f32.partialorder %v441_v35, 0.0  ;;  %v535_v40 = vsel %vm503_vm1, %v449_v31, %v519_v34  ;;  %v462_v44 = vadd.f32 %v1128_v37, %v1404_v26 }
  0xe6   : > { %v453_v39 = vpop.f32.mrf.mxu0  ;;  %v549_v49 = vpack.c.bf16 %v535_v40, %v534_v47 }
  0xe7   : > { %v454_v41 = vadd.f32 %v1404_v26, %v453_v39  ;;  %v533_v43 = vsel %vm501_vm4, %v441_v35, %v517_v38  ;;  %v522_v54 = vmul.f32 0.25, %v462_v44  ;;  %vm506_vm7 = vcmp.ge.f32.partialorder %v462_v44, 0.0  ;;  %v1442_v38 = vld [vmem:[%s1492_s4] ss:$0 sm:$0xff] }
  0xe8   : > { %v1129_v45 = vpop.f32.mrf.mxu0  ;;  %v548_v46 = vpack.c.bf16 %v533_v43, %v532_v42 }
  0xe9   : > { %v465_v48 = vadd.f32 %v1129_v45, %v1404_v26  ;;  %v520_v51 = vmul.f32 0.25, %v454_v41  ;;  %vm504_vm6 = vcmp.ge.f32.partialorder %v454_v41, 0.0  ;;  %v538_v1 = vsel %vm506_vm7, %v462_v44, %v522_v54 }
  0xea   : > { %v456_v50 = vpop.f32.mrf.mxu0  ;;  %1154 = vmatprep.mubr.bf16.mxu1 %v548_v46 }
  0xeb   : > { %vm507_vm5 = vcmp.ge.f32.partialorder %v465_v48, 0.0  ;;  %v523_v52 = vmul.f32 0.25, %v465_v48  ;;  %v457_v53 = vadd.f32 %v1404_v26, %v456_v50  ;;  %1155 = vmatmul.mubr.bf16.vlgmr.msra.gmra.mxu1 %v549_v49  ;;  %v536_v60 = vsel %vm504_vm6, %v454_v41, %v520_v51 }
  0xec   : > { %v1132_v55 = vpop.f32.mrf.mxu0  ;;  %1210 = vmatpush3.bf16.msra.mxu1 %v1246_v20 }
  0xed   : > { %vm505_vm8 = vcmp.ge.f32.partialorder %v457_v53, 0.0  ;;  %v521_v56 = vmul.f32 0.25, %v457_v53  ;;  %1203 = vmatprep.subr.bf16.mxu1 %v1376_v21  ;;  %v539_v58 = vsel %vm507_vm5, %v465_v48, %v523_v52  ;;  %v478_v62 = vadd.f32 %v1132_v55, %v1404_v26 }
  0xee   : > { %v469_v57 = vpop.f32.mrf.mxu0  ;;  %v551_v3 = vpack.c.bf16 %v539_v58, %v538_v1 }
  0xef   : > { %v470_v59 = vadd.f32 %v1404_v26, %v469_v57  ;;  %v537_v61 = vsel %vm505_vm8, %v457_v53, %v521_v56  ;;  %v526_v8 = vmul.f32 0.25, %v478_v62  ;;  %vm510_vm11 = vcmp.ge.f32.partialorder %v478_v62, 0.0 }
  0xf0   : > { %v1133_v63 = vpop.f32.mrf.mxu0  ;;  %v550_v0 = vpack.c.bf16 %v537_v61, %v536_v60  ;;  %1211 = vmatpush3.bf16.msra.mxu1 %v1376_v21 }
  0xf1   : > { %v481_v2 = vadd.f32 %v1133_v63, %v1404_v26  ;;  %1204 = vmatprep.subr.bf16.mxu1 %v1382_v22  ;;  %v524_v5 = vmul.f32 0.25, %v470_v59  ;;  %vm508_vm10 = vcmp.ge.f32.partialorder %v470_v59, 0.0  ;;  %v542_v19 = vsel %vm510_vm11, %v478_v62, %v526_v8 }
  0xf2   : > { %v472_v4 = vpop.f32.mrf.mxu0  ;;  %1158 = vmatprep.mubr.bf16.mxu1 %v550_v0 }
  0xf3   : > { %vm511_vm9 = vcmp.ge.f32.partialorder %v481_v2, 0.0  ;;  %v527_v6 = vmul.f32 0.25, %v481_v2  ;;  %v473_v7 = vadd.f32 %v1404_v26, %v472_v4  ;;  %1159 = vmatmul.mubr.bf16.gmra.mxu1 %v551_v3  ;;  %v540_v14 = vsel %vm508_vm10, %v470_v59, %v524_v5 }
  0xf4   : > { %v1136_v9 = vpop.f32.mrf.mxu0  ;;  %1212 = vmatpush3.bf16.msra.mxu1 %v1382_v22 }
  0xf5   : > { %vm509_vm12 = vcmp.ge.f32.partialorder %v473_v7, 0.0  ;;  %v525_v10 = vmul.f32 0.25, %v473_v7  ;;  %1205 = vmatprep.subr.bf16.mxu1 %v1389_v23  ;;  %v543_v12 = vsel %vm511_vm9, %v481_v2, %v527_v6  ;;  %v494_v16 = vadd.f32 %v1136_v9, %v1404_v26 }
  0xf6   : > { %v485_v11 = vpop.f32.mrf.mxu0  ;;  %v553_v21 = vpack.c.bf16 %v543_v12, %v542_v19 }
  0xf7   : > { %v486_v13 = vadd.f32 %v1404_v26, %v485_v11  ;;  %v541_v15 = vsel %vm509_vm12, %v473_v7, %v525_v10  ;;  %v530_v29 = vmul.f32 0.25, %v494_v16  ;;  %vm514_vm15 = vcmp.ge.f32.partialorder %v494_v16, 0.0 }
  0xf8   : > { %v1137_v17 = vpop.f32.mrf.mxu0  ;;  %v552_v18 = vpack.c.bf16 %v541_v15, %v540_v14  ;;  %1213 = vmatpush3.bf16.msra.mxu1 %v1389_v23 }
  0xf9   : > { %v497_v20 = vadd.f32 %v1137_v17, %v1404_v26  ;;  %1206 = vmatprep.subr.bf16.mxu1 %v1396_v24  ;;  %v528_v25 = vmul.f32 0.25, %v486_v13  ;;  %vm512_vm14 = vcmp.ge.f32.partialorder %v486_v13, 0.0  ;;  %v546_v34 = vsel %vm514_vm15, %v494_v16, %v530_v29 }
  0xfa   : > { %v488_v22 = vpop.f32.mrf.mxu0  ;;  %1162 = vmatprep.mubr.bf16.mxu1 %v552_v18 }
  0xfb   : > { %vm515_vm13 = vcmp.ge.f32.partialorder %v497_v20, 0.0  ;;  %v531_v27 = vmul.f32 0.25, %v497_v20  ;;  %v489_v28 = vadd.f32 %v1404_v26, %v488_v22  ;;  %1163 = vmatmul.mubr.bf16.gmra.mxu1 %v553_v21  ;;  %v544_v31 = vsel %vm512_vm14, %v486_v13, %v528_v25  ;;  %v1251_v26 = vld [vmem:[%s1493_s5 + $0x10] sm:$0xff]  }
  0xfc   : > { %1214 = vmatpush3.bf16.msra.mxu1 %v1396_v24  ;;  %1180 = vmatprep.subr.bf16.mxu0 %v1251_v26  ;;  %v1252_v24 = vld [vmem:[%s1493_s5 + $0x8] sm:$0xff]  }
  0xfd   : > { %vm513_vm0 = vcmp.ge.f32.partialorder %v489_v28, 0.0  ;;  %v529_v23 = vmul.f32 0.25, %v489_v28  ;;  %v547_v30 = vsel %vm515_vm13, %v497_v20, %v531_v27  ;;  %1207 = vmatprep.subr.bf16.mxu1 %v1251_v26  ;;  %1181 = vmatpush3.bf16.msra.mxu0 %v1251_v26 }
  0xfe   : > { %v555_v35 = vpack.c.bf16 %v547_v30, %v546_v34  ;;  %1182 = vmatprep.subr.bf16.mxu0 %v1252_v24 }
  0xff   : > { %v545_v32 = vsel %vm513_vm0, %v489_v28, %v529_v23 }
 0x100   : > { %v554_v33 = vpack.c.bf16 %v545_v32, %v544_v31  ;;  %1215 = vmatpush3.bf16.msra.mxu1 %v1251_v26 }
 0x101   : > { %1208 = vmatprep.subr.bf16.mxu1 %v1252_v24  ;;  %1183 = vmatpush3.bf16.msra.mxu0 %v1252_v24 }
 0x102   : > { %1166 = vmatprep.mubr.bf16.mxu1 %v554_v33  ;;  %1184 = vmatprep.subr.bf16.mxu0 %v1253_v36 }
 0x103   : > { %1167 = vmatmul.mubr.bf16.gmra.mxu1 %v555_v35 }
 0x104   : > { %1216 = vmatpush3.bf16.msra.mxu1 %v1252_v24 }
 0x105   : > { %1209 = vmatprep.subr.bf16.mxu1 %v1253_v36  ;;  %1185 = vmatpush3.bf16.msra.mxu0 %v1253_v36 }
 0x108   : > { %1217 = vmatpush3.bf16.msra.mxu1 %v1253_v36 }
 0x1ab   : > { %v1156_v37 = vpop.f32.mrf.mxu1 }
 0x1ac   : > { %v670_v41 = vadd.f32 %v1156_v37, %v1442_v38 }
 0x1ad   : > { %v661_v39 = vpop.f32.mrf.mxu1 }
 0x1ae   : > { %v662_v40 = vadd.f32 %v1442_v38, %v661_v39  ;;  %v742_v48 = vmul.f32 0.25, %v670_v41  ;;  %vm726_vm3 = vcmp.ge.f32.partialorder %v670_v41, 0.0 }
 0x1af   : > { %v1157_v42 = vpop.f32.mrf.mxu1 }
 0x1b0   : > { %v673_v43 = vadd.f32 %v1157_v42, %v1442_v38  ;;  %v740_v45 = vmul.f32 0.25, %v662_v40  ;;  %vm724_vm2 = vcmp.ge.f32.partialorder %v662_v40, 0.0  ;;  %v758_v56 = vsel %vm726_vm3, %v670_v41, %v742_v48 }
 0x1b1   : > { %v664_v44 = vpop.f32.mrf.mxu1 }
 0x1b2   : > { %vm727_vm1 = vcmp.ge.f32.partialorder %v673_v43, 0.0  ;;  %v743_v46 = vmul.f32 0.25, %v673_v43  ;;  %v665_v47 = vadd.f32 %v1442_v38, %v664_v44  ;;  %v756_v54 = vsel %vm724_vm2, %v662_v40, %v740_v45 }
 0x1b3   : > { %v1160_v49 = vpop.f32.mrf.mxu1 }
 0x1b4   : > { %vm725_vm4 = vcmp.ge.f32.partialorder %v665_v47, 0.0  ;;  %v741_v50 = vmul.f32 0.25, %v665_v47  ;;  %v759_v51 = vsel %vm727_vm1, %v673_v43, %v743_v46  ;;  %v686_v57 = vadd.f32 %v1160_v49, %v1442_v38 }
 0x1b5   : > { %v677_v52 = vpop.f32.mrf.mxu1  ;;  %v773_v60 = vpack.c.bf16 %v759_v51, %v758_v56 }
 0x1b6   : > { %v678_v53 = vadd.f32 %v1442_v38, %v677_v52  ;;  %v757_v55 = vsel %vm725_vm4, %v665_v47, %v741_v50  ;;  %v746_v2 = vmul.f32 0.25, %v686_v57  ;;  %vm730_vm7 = vcmp.ge.f32.partialorder %v686_v57, 0.0  ;;  %v1059_v47 = vld [vmem:[%s1494_s6] ss:$0 sm:$0xff] }
 0x1b7   : > { %v1161_v58 = vpop.f32.mrf.mxu1  ;;  %v772_v59 = vpack.c.bf16 %v757_v55, %v756_v54 }
 0x1b8   : > { %v689_v61 = vadd.f32 %v1161_v58, %v1442_v38  ;;  %v744_v63 = vmul.f32 0.25, %v678_v53  ;;  %vm728_vm6 = vcmp.ge.f32.partialorder %v678_v53, 0.0  ;;  %v762_v13 = vsel %vm730_vm7, %v686_v57, %v746_v2 }
 0x1b9   : > { %v680_v62 = vpop.f32.mrf.mxu1  ;;  %1186 = vmatprep.mubr.bf16.mxu0 %v772_v59 }
 0x1ba   : > { %vm731_vm5 = vcmp.ge.f32.partialorder %v689_v61, 0.0  ;;  %v747_v0 = vmul.f32 0.25, %v689_v61  ;;  %v681_v1 = vadd.f32 %v1442_v38, %v680_v62  ;;  %1187 = vmatmul.mubr.bf16.vlgmr.msra.gmra.mxu0 %v773_v60  ;;  %v760_v8 = vsel %vm728_vm6, %v678_v53, %v744_v63 }
 0x1bb   : > { %v1164_v3 = vpop.f32.mrf.mxu1 }
 0x1bc   : > { %vm729_vm8 = vcmp.ge.f32.partialorder %v681_v1, 0.0  ;;  %v745_v4 = vmul.f32 0.25, %v681_v1  ;;  %v763_v6 = vsel %vm731_vm5, %v689_v61, %v747_v0  ;;  %v702_v10 = vadd.f32 %v1164_v3, %v1442_v38 }
 0x1bd   : > { %v693_v5 = vpop.f32.mrf.mxu1  ;;  %v775_v15 = vpack.c.bf16 %v763_v6, %v762_v13 }
 0x1be   : > { %v694_v7 = vadd.f32 %v1442_v38, %v693_v5  ;;  %v761_v9 = vsel %vm729_vm8, %v681_v1, %v745_v4  ;;  %v750_v20 = vmul.f32 0.25, %v702_v10  ;;  %vm734_vm11 = vcmp.ge.f32.partialorder %v702_v10, 0.0 }
 0x1bf   : > { %v1165_v11 = vpop.f32.mrf.mxu1  ;;  %v774_v12 = vpack.c.bf16 %v761_v9, %v760_v8 }
 0x1c0   : > { %v705_v14 = vadd.f32 %v1165_v11, %v1442_v38  ;;  %v748_v17 = vmul.f32 0.25, %v694_v7  ;;  %vm732_vm10 = vcmp.ge.f32.partialorder %v694_v7, 0.0  ;;  %v766_v33 = vsel %vm734_vm11, %v702_v10, %v750_v20 }
 0x1c1   : > { %v696_v16 = vpop.f32.mrf.mxu1  ;;  %1190 = vmatprep.mubr.bf16.mxu0 %v774_v12 }
 0x1c2   : > { %vm735_vm9 = vcmp.ge.f32.partialorder %v705_v14, 0.0  ;;  %v751_v18 = vmul.f32 0.25, %v705_v14  ;;  %v697_v19 = vadd.f32 %v1442_v38, %v696_v16  ;;  %1191 = vmatmul.mubr.bf16.gmra.mxu0 %v775_v15  ;;  %v764_v29 = vsel %vm732_vm10, %v694_v7, %v748_v17 }
 0x1c3   : > { %v1168_v21 = vpop.f32.mrf.mxu1 }
 0x1c4   : > { %vm733_vm12 = vcmp.ge.f32.partialorder %v697_v19, 0.0  ;;  %v749_v22 = vmul.f32 0.25, %v697_v19  ;;  %v767_v27 = vsel %vm735_vm9, %v705_v14, %v751_v18  ;;  %v718_v30 = vadd.f32 %v1168_v21, %v1442_v38 }
 0x1c5   : > { %v709_v25 = vpop.f32.mrf.mxu1  ;;  %v777_v35 = vpack.c.bf16 %v767_v27, %v766_v33 }
 0x1c6   : > { %v710_v28 = vadd.f32 %v1442_v38, %v709_v25  ;;  %v765_v23 = vsel %vm733_vm12, %v697_v19, %v749_v22  ;;  %v754_v39 = vmul.f32 0.25, %v718_v30  ;;  %vm738_vm15 = vcmp.ge.f32.partialorder %v718_v30, 0.0 }
 0x1c7   : > { %v1169_v31 = vpop.f32.mrf.mxu1  ;;  %v776_v32 = vpack.c.bf16 %v765_v23, %v764_v29 }
 0x1c8   : > { %v721_v34 = vadd.f32 %v1169_v31, %v1442_v38  ;;  %v752_v24 = vmul.f32 0.25, %v710_v28  ;;  %vm736_vm14 = vcmp.ge.f32.partialorder %v710_v28, 0.0  ;;  %v770_v44 = vsel %vm738_vm15, %v718_v30, %v754_v39 }
 0x1c9   : > { %v712_v26 = vpop.f32.mrf.mxu1  ;;  %1194 = vmatprep.mubr.bf16.mxu0 %v776_v32 }
 0x1ca   : > { %vm739_vm13 = vcmp.ge.f32.partialorder %v721_v34, 0.0  ;;  %v755_v36 = vmul.f32 0.25, %v721_v34  ;;  %v713_v37 = vadd.f32 %v1442_v38, %v712_v26  ;;  %1195 = vmatmul.mubr.bf16.gmra.mxu0 %v777_v35  ;;  %v768_v42 = vsel %vm736_vm14, %v710_v28, %v752_v24 }
 0x1cc   : > { %vm737_vm0 = vcmp.ge.f32.partialorder %v713_v37, 0.0  ;;  %v753_v40 = vmul.f32 0.25, %v713_v37  ;;  %v771_v41 = vsel %vm739_vm13, %v721_v34, %v755_v36 }
 0x1cd   : > { %v779_v46 = vpack.c.bf16 %v771_v41, %v770_v44 }
 0x1ce   : > { %v769_v43 = vsel %vm737_vm0, %v713_v37, %v753_v40 }
 0x1cf   : > { %v778_v45 = vpack.c.bf16 %v769_v43, %v768_v42 }
 0x1d1   : > { %1198 = vmatprep.mubr.bf16.mxu1 %v778_v45 }
 0x1d2   : > { %1199 = vmatmul.mubr.bf16.vlgmr.msra.gmra.mxu1 %v779_v46 }
 0x27a   : > { %v1188_v38 = vpop.f32.mrf.mxu0 }
 0x27b   : > { %v894_v48 = vadd.f32 %v1188_v38, %v1059_v47 }
 0x27c   : > { %v885_v49 = vpop.f32.mrf.mxu0 }
 0x27d   : > { %950 = vst [vmem:[%s1467_s15 + $0x10] sm:$0xff] %v894_v48  ;;  %v886_v50 = vadd.f32 %v1059_v47, %v885_v49 }
 0x27e   : > { %v1189_v51 = vpop.f32.mrf.mxu0 }
 0x27f   : > { %948 = vst [vmem:[%s1467_s15] sm:$0xff] %v886_v50  ;;  %v897_v52 = vadd.f32 %v1189_v51, %v1059_v47 }
 0x280   : > { %v888_v53 = vpop.f32.mrf.mxu0 }
 0x281   : > { %951 = vst [vmem:[%s1467_s15 + $0x18] sm:$0xff] %v897_v52  ;;  %v889_v54 = vadd.f32 %v1059_v47, %v888_v53 }
 0x282   : > { %v1192_v55 = vpop.f32.mrf.mxu0 }
 0x283   : > { %949 = vst [vmem:[%s1467_s15 + $0x8] sm:$0xff] %v889_v54  ;;  %v910_v56 = vadd.f32 %v1192_v55, %v1059_v47 }
 0x284   : > { %v901_v57 = vpop.f32.mrf.mxu0 }
 0x285   : > { %954 = vst [vmem:[%s1467_s15 + $0x30] sm:$0xff] %v910_v56  ;;  %v902_v58 = vadd.f32 %v1059_v47, %v901_v57 }
 0x286   : > { %v1193_v59 = vpop.f32.mrf.mxu0 }
 0x287   : > { %952 = vst [vmem:[%s1467_s15 + $0x20] sm:$0xff] %v902_v58  ;;  %v913_v60 = vadd.f32 %v1193_v59, %v1059_v47 }
 0x288   : > { %v904_v61 = vpop.f32.mrf.mxu0 }
 0x289   : > { %955 = vst [vmem:[%s1467_s15 + $0x38] sm:$0xff] %v913_v60  ;;  %v905_v62 = vadd.f32 %v1059_v47, %v904_v61 }
 0x28a   : > { %v1196_v63 = vpop.f32.mrf.mxu0 }
 0x28b   : > { %953 = vst [vmem:[%s1467_s15 + $0x28] sm:$0xff] %v905_v62  ;;  %v926_v0 = vadd.f32 %v1196_v63, %v1059_v47 }
 0x28c   : > { %v917_v1 = vpop.f32.mrf.mxu0 }
 0x28d   : > { %958 = vst [vmem:[%s1467_s15 + $0x50] sm:$0xff] %v926_v0  ;;  %v918_v2 = vadd.f32 %v1059_v47, %v917_v1 }
 0x28e   : > { %v1197_v3 = vpop.f32.mrf.mxu0 }
 0x28f   : > { %956 = vst [vmem:[%s1467_s15 + $0x40] sm:$0xff] %v918_v2  ;;  %v929_v4 = vadd.f32 %v1197_v3, %v1059_v47 }
 0x290   : > { %v920_v5 = vpop.f32.mrf.mxu0 }
 0x291   : > { %959 = vst [vmem:[%s1467_s15 + $0x58] sm:$0xff] %v929_v4  ;;  %v921_v6 = vadd.f32 %v1059_v47, %v920_v5 }
 0x292   : > { %v1200_v7 = vpop.f32.mrf.mxu1 }
 0x293   : > { %957 = vst [vmem:[%s1467_s15 + $0x48] sm:$0xff] %v921_v6  ;;  %v942_v8 = vadd.f32 %v1200_v7, %v1059_v47 }
 0x294   : > { %v933_v9 = vpop.f32.mrf.mxu1 }
 0x295   : > { %962 = vst [vmem:[%s1467_s15 + $0x70] sm:$0xff] %v942_v8  ;;  %v934_v10 = vadd.f32 %v1059_v47, %v933_v9 }
 0x296   : > { %v1201_v11 = vpop.f32.mrf.mxu1 }
 0x297   : > { %960 = vst [vmem:[%s1467_s15 + $0x60] sm:$0xff] %v934_v10  ;;  %v945_v12 = vadd.f32 %v1201_v11, %v1059_v47 }
 0x298   : > { %v936_v13 = vpop.f32.mrf.mxu1 }
 0x299   : > { %963 = vst [vmem:[%s1467_s15 + $0x78] sm:$0xff] %v945_v12  ;;  %v937_v14 = vadd.f32 %v1059_v47, %v936_v13 }
 0x29b   : > { %961 = vst [vmem:[%s1467_s15 + $0x68] sm:$0xff] %v937_v14 }
 0x29c PF: > { %s17_s24 = sadd.s32 1, %s1260_s24  }
 0x29d   : > { %p14_p4 = scmp.ge.s32.totalorder %s17_s24, 4  }
 0x29f   :  { %16 = sbr.rel (!%p14_p4) target bundleno = 1 (0x1), region = 78 }

</bundles_post_ra>
